<compile_context>
chip_gen: v7x
topology: tpu7x:2x2x1
jax: 0.10.0
libtpu: 0.0.40
codegen_flags: <defaults>
</compile_context>

<pallas_src>
import functools

import jax
import jax.numpy as jnp
from jax.experimental import pallas as pl
from jax.experimental.pallas import tpu as pltpu


def _discriminator_kernel(x_ref, w1_ref, b1_ref, w2_ref, b2_ref, w3t_ref, b3_ref,
                          o_ref):
    # Fused 3-layer MLP on one batch tile. bf16 operands feed the MXU with f32
    # accumulation; ReLU / sigmoid are VPU / EUP elementwise work.
    x = x_ref[...].astype(jnp.bfloat16)                       # (block_b, in_dim)

    h1 = jnp.dot(x, w1_ref[...], preferred_element_type=jnp.float32) + b1_ref[...]
    h1 = jnp.maximum(h1, 0.0).astype(jnp.bfloat16)            # (block_b, 256)

    h2 = jnp.dot(h1, w2_ref[...], preferred_element_type=jnp.float32) + b2_ref[...]
    h2 = jnp.maximum(h2, 0.0).astype(jnp.bfloat16)            # (block_b, 256)

    # Final 256 -> 1 layer as (1, 256) . (block_b, 256)^T so the result is already
    # laid out lane-dense as (1, block_b): one output lane per batch row.
    logits = jax.lax.dot_general(
        w3t_ref[...], h2,
        dimension_numbers=(((1,), (1,)), ((), ())),
        preferred_element_type=jnp.float32)                   # (1, block_b)
    o_ref[...] = jax.nn.sigmoid(logits + b3_ref[...])


@functools.partial(jax.jit, static_argnames=("block_b",))
def discriminator_forward(x, params, *, block_b=256):
    """Runs the Discriminator forward pass as a single fused Pallas kernel.

    x: (B, input_size) float32
    params: dict with w1 (in,256), b1 (1,256), w2 (256,256), b2 (1,256),
            w3 (256,1), b3 (1,1)  (all float32, PyTorch nn.Linear semantics)
    returns: (B, 1) float32 in (0, 1)
    """
    assert block_b % 128 == 0, "batch tile must be a multiple of 128"
    B, in_dim = x.shape
    hidden = params["w1"].shape[1]

    # Pad the batch to a multiple of the tile so any B works; padded rows are
    # sliced off after the call.
    num_tiles = (B + block_b - 1) // block_b
    B_pad = num_tiles * block_b
    if B_pad != B:
        x = jnp.pad(x, ((0, B_pad - B), (0, 0)))

    # bf16 operands for the MXU; biases stay f32 (accumulation is f32).
    w1 = params["w1"].astype(jnp.bfloat16)                    # (in_dim, 256)
    w2 = params["w2"].astype(jnp.bfloat16)                    # (256, 256)
    w3t = params["w3"].reshape(1, hidden).astype(jnp.bfloat16)  # (1, 256)
    b1 = params["b1"].astype(jnp.float32)                     # (1, 256)
    b2 = params["b2"].astype(jnp.float32)                     # (1, 256)
    b3 = params["b3"].astype(jnp.float32)                     # (1, 1)

    flops = 2 * B_pad * (in_dim * hidden + hidden * hidden + hidden)
    bytes_accessed = (
        x.size * x.dtype.itemsize
        + (w1.size + w2.size + w3t.size) * 2
        + (b1.size + b2.size + b3.size) * 4
        + B_pad * 4)

    out = pl.pallas_call(
        _discriminator_kernel,
        out_shape=jax.ShapeDtypeStruct((1, B_pad), jnp.float32),
        grid_spec=pltpu.PrefetchScalarGridSpec(
            num_scalar_prefetch=0,
            grid=(num_tiles,),
            in_specs=[
                # batch-tiled input
                pl.BlockSpec((block_b, in_dim), lambda i: (i, 0)),
                # weights / biases: full arrays, same block for every grid step
                pl.BlockSpec((in_dim, hidden), lambda i: (0, 0)),
                pl.BlockSpec((1, hidden), lambda i: (0, 0)),
                pl.BlockSpec((hidden, hidden), lambda i: (0, 0)),
                pl.BlockSpec((1, hidden), lambda i: (0, 0)),
                pl.BlockSpec((1, hidden), lambda i: (0, 0)),
                pl.BlockSpec((1, 1), lambda i: (0, 0)),
            ],
            # lane-dense output row per batch tile
            out_specs=pl.BlockSpec((1, block_b), lambda i: (0, i)),
        ),
        compiler_params=pltpu.CompilerParams(
            dimension_semantics=("parallel",)),
        cost_estimate=pl.CostEstimate(
            flops=flops, transcendentals=B_pad, bytes_accessed=bytes_accessed),
    )(x, w1, b1, w2, b2, w3t, b3)

    return out.reshape(-1)[:B].reshape(B, 1)


def init_discriminator_params(key, input_size, hidden=256):
    """Deterministic init matching nn.Linear's default U(-1/sqrt(fan_in), 1/sqrt(fan_in))."""
    def linear_init(k, fan_in, fan_out):
        kw, kb = jax.random.split(k)
        bound = 1.0 / jnp.sqrt(fan_in)
        w = jax.random.uniform(kw, (fan_in, fan_out), jnp.float32, -bound, bound)
        b = jax.random.uniform(kb, (1, fan_out), jnp.float32, -bound, bound)
        return w, b

    k1, k2, k3 = jax.random.split(key, 3)
    w1, b1 = linear_init(k1, input_size, hidden)
    w2, b2 = linear_init(k2, hidden, hidden)
    w3, b3 = linear_init(k3, hidden, 1)
    return {"w1": w1, "b1": b1, "w2": w2, "b2": b2, "w3": w3, "b3": b3}


def discriminator_forward_ref(x, params):
    h1 = jnp.maximum(x @ params["w1"] + params["b1"], 0.0)
    h2 = jnp.maximum(h1 @ params["w2"] + params["b2"], 0.0)
    return jax.nn.sigmoid(h2 @ params["w3"] + params["b3"])


if __name__ == "__main__":
    key = jax.random.PRNGKey(0)
    k_params, k_x = jax.random.split(key)

    # The module's forward is applied to (B, 9) inputs (xyz | d_xyz | goal_pos).
    # B chosen to exercise both the multi-tile grid (2 tiles of 256) and padding.
    batch = 500
    input_size = 9

    params = init_discriminator_params(k_params, input_size)
    x = jax.random.normal(k_x, (batch, input_size), jnp.float32)

    out = discriminator_forward(x, params, block_b=256)
    out = jax.block_until_ready(out)

    # Correctness check against a pure-JAX f32 reference of the same MLP
    # (tolerance loosened for the bf16-operand / f32-accumulate matmuls).
    ref = discriminator_forward_ref(x, params)
    assert out.shape == (batch, 1)
    assert jnp.allclose(out, ref, atol=2e-2, rtol=2e-2), "mismatch vs reference"
    assert bool(jnp.all((out > 0.0) & (out < 1.0)))

    # TODO(synk): BCELoss / Adam update() and the batch preprocessing are training-side
    # logic, not part of the forward pass, so they are not implemented as kernels.
    print("KERNEL_OK")
</pallas_src>

<mosaic_0001>
module attributes {stable_mosaic.version = 11 : i64} {
  func.func @_discriminator_kernel(%arg0: i32, %arg1: memref<256x9xf32, #tpu.memory_space<vmem>>, %arg2: memref<9x256xbf16, #tpu.memory_space<vmem>>, %arg3: memref<1x256xf32, #tpu.memory_space<vmem>>, %arg4: memref<256x256xbf16, #tpu.memory_space<vmem>>, %arg5: memref<1x256xf32, #tpu.memory_space<vmem>>, %arg6: memref<1x256xbf16, #tpu.memory_space<vmem>>, %arg7: memref<1x1xf32, #tpu.memory_space<vmem>>, %arg8: memref<1x256xf32, #tpu.memory_space<vmem>>) attributes {dimension_semantics = [#tpu.dimension_semantics<parallel>], iteration_bounds = array<i64: 2>, scalar_prefetch = 0 : i64, scratch_operands = 0 : i64, tpu.core_type = #tpu.core_type<tc>, window_params = [{transform_indices = @transform_0, window_bounds = array<i64: 256, 9>}, {pipeline_mode = #tpu.pipeline_mode<synchronous>, transform_indices = @transform_1, window_bounds = array<i64: 9, 256>}, {pipeline_mode = #tpu.pipeline_mode<synchronous>, transform_indices = @transform_2, window_bounds = array<i64: 1, 256>}, {pipeline_mode = #tpu.pipeline_mode<synchronous>, transform_indices = @transform_3, window_bounds = array<i64: 256, 256>}, {pipeline_mode = #tpu.pipeline_mode<synchronous>, transform_indices = @transform_4, window_bounds = array<i64: 1, 256>}, {pipeline_mode = #tpu.pipeline_mode<synchronous>, transform_indices = @transform_5, window_bounds = array<i64: 1, 256>}, {pipeline_mode = #tpu.pipeline_mode<synchronous>, transform_indices = @transform_6, window_bounds = array<i64: 1, 1>}, {transform_indices = @transform_7, window_bounds = array<i64: 1, 256>}]} {
    %c0 = arith.constant 0 : index
    %c0_0 = arith.constant 0 : index
    %0 = vector.load %arg1[%c0, %c0_0] : memref<256x9xf32, #tpu.memory_space<vmem>>, vector<256x9xf32>
    %1 = arith.truncf %0 : vector<256x9xf32> to vector<256x9xbf16>
    %c0_1 = arith.constant 0 : index
    %c0_2 = arith.constant 0 : index
    %2 = vector.load %arg2[%c0_1, %c0_2] : memref<9x256xbf16, #tpu.memory_space<vmem>>, vector<9x256xbf16>
    %cst = arith.constant dense<0.000000e+00> : vector<256x256xf32>
    %3 = tpu.matmul %1, %2, %cst {dimension_numbers = #tpu.dot_dimension_numbers<[1], [0], [0], [1], [0, 0, 1, 1], [], []>} : vector<256x9xbf16>, vector<9x256xbf16>, vector<256x256xf32> -> vector<256x256xf32>
    %c0_3 = arith.constant 0 : index
    %c0_4 = arith.constant 0 : index
    %4 = vector.load %arg3[%c0_3, %c0_4] : memref<1x256xf32, #tpu.memory_space<vmem>>, vector<1x256xf32>
    %5 = vector.broadcast %4 : vector<1x256xf32> to vector<256x256xf32>
    %6 = arith.addf %3, %5 : vector<256x256xf32>
    %cst_5 = arith.constant 0.000000e+00 : f32
    %7 = vector.broadcast %cst_5 : f32 to vector<256x256xf32>
    %8 = arith.maximumf %6, %7 : vector<256x256xf32>
    %9 = arith.truncf %8 : vector<256x256xf32> to vector<256x256xbf16>
    %c0_6 = arith.constant 0 : index
    %c0_7 = arith.constant 0 : index
    %10 = vector.load %arg4[%c0_6, %c0_7] : memref<256x256xbf16, #tpu.memory_space<vmem>>, vector<256x256xbf16>
    %cst_8 = arith.constant dense<0.000000e+00> : vector<256x256xf32>
    %11 = tpu.matmul %9, %10, %cst_8 {dimension_numbers = #tpu.dot_dimension_numbers<[1], [0], [0], [1], [0, 0, 1, 1], [], []>} : vector<256x256xbf16>, vector<256x256xbf16>, vector<256x256xf32> -> vector<256x256xf32>
    %c0_9 = arith.constant 0 : index
    %c0_10 = arith.constant 0 : index
    %12 = vector.load %arg5[%c0_9, %c0_10] : memref<1x256xf32, #tpu.memory_space<vmem>>, vector<1x256xf32>
    %13 = vector.broadcast %12 : vector<1x256xf32> to vector<256x256xf32>
    %14 = arith.addf %11, %13 : vector<256x256xf32>
    %cst_11 = arith.constant 0.000000e+00 : f32
    %15 = vector.broadcast %cst_11 : f32 to vector<256x256xf32>
    %16 = arith.maximumf %14, %15 : vector<256x256xf32>
    %17 = arith.truncf %16 : vector<256x256xf32> to vector<256x256xbf16>
    %c0_12 = arith.constant 0 : index
    %c0_13 = arith.constant 0 : index
    %18 = vector.load %arg6[%c0_12, %c0_13] : memref<1x256xbf16, #tpu.memory_space<vmem>>, vector<1x256xbf16>
    %cst_14 = arith.constant dense<0.000000e+00> : vector<1x256xf32>
    %19 = tpu.matmul %18, %17, %cst_14 {dimension_numbers = #tpu.dot_dimension_numbers<[1], [1], [0], [0], [0, 0, 1, 0], [], []>} : vector<1x256xbf16>, vector<256x256xbf16>, vector<1x256xf32> -> vector<1x256xf32>
    %c0_15 = arith.constant 0 : index
    %c0_16 = arith.constant 0 : index
    %20 = vector.load %arg7[%c0_15, %c0_16] : memref<1x1xf32, #tpu.memory_space<vmem>>, vector<1x1xf32>
    %21 = vector.broadcast %20 : vector<1x1xf32> to vector<1x256xf32>
    %22 = arith.addf %19, %21 : vector<1x256xf32>
    %23 = arith.negf %22 : vector<1x256xf32>
    %24 = math.exp %23 : vector<1x256xf32>
    %cst_17 = arith.constant 1.000000e+00 : f32
    %25 = vector.broadcast %cst_17 : f32 to vector<1x256xf32>
    %26 = arith.addf %25, %24 : vector<1x256xf32>
    %27 = arith.divf %25, %26 : vector<1x256xf32>
    %c0_18 = arith.constant 0 : index
    %c0_19 = arith.constant 0 : index
    %28 = vector.load %arg8[%c0_18, %c0_19] : memref<1x256xf32, #tpu.memory_space<vmem>>, vector<1x256xf32>
    tpu.vector_store %arg8[%c0_18, %c0_19], %27 {strides = array<i32>} : memref<1x256xf32, #tpu.memory_space<vmem>>, vector<1x256xf32>,
    return
  }
  func.func @transform_0(%arg0: i32) -> (i32, i32) {
    %c0_i32 = arith.constant 0 : i32
    %c0_i32_0 = arith.constant 0 : i32
    return %arg0, %c0_i32 : i32, i32
  }
  func.func @transform_1(%arg0: i32) -> (i32, i32) {
    %c0_i32 = arith.constant 0 : i32
    %c0_i32_0 = arith.constant 0 : i32
    %c0_i32_1 = arith.constant 0 : i32
    return %c0_i32, %c0_i32_0 : i32, i32
  }
  func.func @transform_2(%arg0: i32) -> (i32, i32) {
    %c0_i32 = arith.constant 0 : i32
    %c0_i32_0 = arith.constant 0 : i32
    %c0_i32_1 = arith.constant 0 : i32
    return %c0_i32, %c0_i32_0 : i32, i32
  }
  func.func @transform_3(%arg0: i32) -> (i32, i32) {
    %c0_i32 = arith.constant 0 : i32
    %c0_i32_0 = arith.constant 0 : i32
    %c0_i32_1 = arith.constant 0 : i32
    return %c0_i32, %c0_i32_0 : i32, i32
  }
  func.func @transform_4(%arg0: i32) -> (i32, i32) {
    %c0_i32 = arith.constant 0 : i32
    %c0_i32_0 = arith.constant 0 : i32
    %c0_i32_1 = arith.constant 0 : i32
    return %c0_i32, %c0_i32_0 : i32, i32
  }
  func.func @transform_5(%arg0: i32) -> (i32, i32) {
    %c0_i32 = arith.constant 0 : i32
    %c0_i32_0 = arith.constant 0 : i32
    %c0_i32_1 = arith.constant 0 : i32
    return %c0_i32, %c0_i32_0 : i32, i32
  }
  func.func @transform_6(%arg0: i32) -> (i32, i32) {
    %c0_i32 = arith.constant 0 : i32
    %c0_i32_0 = arith.constant 0 : i32
    %c0_i32_1 = arith.constant 0 : i32
    return %c0_i32, %c0_i32_0 : i32, i32
  }
  func.func @transform_7(%arg0: i32) -> (i32, i32) {
    %c0_i32 = arith.constant 0 : i32
    %c0_i32_0 = arith.constant 0 : i32
    return %c0_i32, %arg0 : i32, i32
  }
}

</mosaic_0001>

<bundles_post_ra>
// kernel: discriminator_forward.1
= control target key start
LH: loop header
LB: loop body
LE: loop exit
PB: predicated region body
PF: predicated region fallthrough
CT: control target
= control target key end

     0   :  { %s1544_s26 = smov 0   ;;  %s1906_s0 = inlined_call_operand.vmem [shape: f32[512,9], index: 0, kind: input, shape index: {}]   ;;  %s1907_s1 = inlined_call_operand.vmem [shape: bf16[9,256], index: 1, kind: input, shape index: {}]   ;;  %s1908_s2 = inlined_call_operand.vmem [shape: f32[1,256], index: 2, kind: input, shape index: {}]   ;;  %s1909_s3 = inlined_call_operand.vmem [shape: bf16[256,256], index: 3, kind: input, shape index: {}]   ;;  %s1910_s4 = inlined_call_operand.vmem [shape: f32[1,256], index: 4, kind: input, shape index: {}]   ;;  %s1911_s5 = inlined_call_operand.vmem [shape: bf16[1,256], index: 5, kind: input, shape index: {}]   ;;  %s1912_s6 = inlined_call_operand.<no memory space> [shape: f32[1,1], index: 6, kind: input, shape index: {}]   ;;  %s1913_s7 = inlined_call_operand.vmem [shape: f32[1,512], index: 7, kind: output, shape index: {}]  }
   0x1   :  { %v12_v0 = vstv %s1912_s6 }
   0x2   :  { %13 = vst [vmem:[#allocation2] sm:$0x1] %v12_v0 }
   0x3 LB: > { %s1356_s27 = sadd.s32 4294967295, %s1496_s26   ;;  %p1360_p0 = scmp.ge.s32.totalorder %s1496_s26, 1  ;;  %s1496_s26 = sphi %s1544_s26, %s19_s26  }
   0x4   : > { %p240_p1 = scmp.lt.s32.totalorder %s1496_s26, 3 }
   0x6   : > { %p241_p2 = pnand %p1360_p0, %p240_p1 }
   0x7   : > { %v1431_v1 = vld [vmem:[%s1907_s1 + $0x4] ss:$8 sps:$4 sm:$0x1f] (!%p241_p2)   ;;  %vm402_vm0 = vcmask (!%p241_p2), 1043456   ;;  %vm403_vm1 = vcmask (!%p241_p2), 1044480   ;;  %v1498_v3 = vmov (!%p241_p2), 65535  }
   0x8   : > { %244 = sbr.rel (%p241_p2) target bundleno = 840 (0x348), region = 48  ;;  %v1433_v2 = vld [vmem:[%s1907_s1] ss:$8 sps:$4 sm:$0x1f] (!%p241_p2)   ;;  %v404_v4 = vsel (!%p241_p2), %vm402_vm0, 4294967295, %v1498_v3  ;;  %s1361_s8 = sshll.u32 (!%p241_p2), %s1356_s27, 5 }
   0x9   : > { %v405_v5 = vsel (!%p241_p2), %vm403_vm1, %v404_v4, 0  ;;  %v1499_v6 = vmov (!%p241_p2), 0   ;;  %p272_p3 = scmp.lt.s32.totalorder (!%p241_p2), %s1361_s8, 63  ;;  %v1434_v9 = vld [vmem:[%s1909_s3 + $0x4] ss:$8 sps:$4 sm:$0xff] (!%p241_p2)   ;;  %vm353_vm2 = vcmask (!%p241_p2), 72704  }
   0xa   : > { %444 = vmatprep.mubr.bf16.mxu0 (!%p241_p2), %v1499_v6  ;;  %1430 = vset.pattern.permute.xlu0 (!%p241_p2), %v1499_v6  ;;  %v410_v7 = vand.u32 (!%p241_p2), %v1431_v1, %v405_v5  ;;  %v407_v8 = vand.u32 (!%p241_p2), %v1433_v2, %v405_v5  ;;  %v1436_v10 = vld [vmem:[%s1909_s3] ss:$8 sps:$4 sm:$0xff] (!%p241_p2)   ;;  %v1437_v11 = vld [vmem:[%s1909_s3 + $0x14] ss:$8 sps:$4 sm:$0xff] (!%p241_p2)   ;;  %v1439_v12 = vld [vmem:[%s1909_s3 + $0x10] ss:$8 sps:$4 sm:$0xff] (!%p241_p2)  }
   0xb   : > { %905 = vmatprep.subr.bf16.mxu1 (!%p241_p2), %v1434_v9  ;;  %v1440_v13 = vld [vmem:[%s1909_s3 + $0x24] ss:$8 sps:$4 sm:$0xff] (!%p241_p2)   ;;  %v1442_v17 = vld [vmem:[%s1909_s3 + $0x20] ss:$8 sps:$4 sm:$0xff] (!%p241_p2)   ;;  %v1443_v18 = vld [vmem:[%s1909_s3 + $0x34] ss:$8 sps:$4 sm:$0xff] (!%p241_p2)  }
   0xc   : > { %412 = vmatprep.subr.bf16.mxu0 (!%p241_p2), %v410_v7  ;;  %906 = vmatpush1.bf16.msra.mxu1 (!%p241_p2), %v1436_v10  ;;  %v1445_v21 = vld [vmem:[%s1909_s3 + $0x30] ss:$8 sps:$4 sm:$0xff] (!%p241_p2)   ;;  %v1446_v23 = vld [vmem:[%s1909_s3 + $0x44] ss:$8 sps:$4 sm:$0xff] (!%p241_p2)   ;;  %v1448_v24 = vld [vmem:[%s1909_s3 + $0x40] ss:$8 sps:$4 sm:$0xff] (!%p241_p2)  }
   0xd   : > { %413 = vmatpush1.bf16.msra.mxu0 (!%p241_p2), %v407_v8  ;;  %907 = vmatprep.subr.bf16.mxu1 (!%p241_p2), %v1437_v11  ;;  %v1449_v26 = vld [vmem:[%s1909_s3 + $0x54] ss:$8 sps:$4 sm:$0xff] (!%p241_p2)   ;;  %v1451_v28 = vld [vmem:[%s1909_s3 + $0x50] ss:$8 sps:$4 sm:$0xff] (!%p241_p2)   ;;  %v1452_v30 = vld [vmem:[%s1909_s3 + $0x64] ss:$8 sps:$4 sm:$0xff] (!%p241_p2)  }
   0xe   : > { %v1454_v31 = vld [vmem:[%s1909_s3 + $0x60] ss:$8 sps:$4 sm:$0xff] (!%p241_p2)   ;;  %v1455_v33 = vld [vmem:[%s1909_s3 + $0x74] ss:$8 sps:$4 sm:$0xff] (!%p241_p2)   ;;  %v1457_v35 = vld [vmem:[%s1909_s3 + $0x70] ss:$8 sps:$4 sm:$0xff] (!%p241_p2)  }
   0xf   : > { %s1915_s8 = smov (!%p272_p3, %s1361_s8), 63  ;;  %v1458_v36 = vld [vmem:[%s1909_s3 + $0x84] ss:$8 sps:$4 sm:$0xff]   ;;  %v1460_v38 = vld [vmem:[%s1909_s3 + $0x80] ss:$8 sps:$4 sm:$0xff]   ;;  %s1363_s18 = sshll.u32 %s1356_s27, 1 }
  0x10   : > { %s1362_s15 = sshll.u32 %s1915_s8, 3  ;;  %908 = vmatpush1.bf16.msra.mxu1 %v1439_v12  ;;  %v1461_v39 = vld [vmem:[%s1909_s3 + $0x94] ss:$8 sps:$4 sm:$0xff]   ;;  %v1463_v42 = vld [vmem:[%s1909_s3 + $0x90] ss:$8 sps:$4 sm:$0xff]   ;;  %p278_p4 = scmp.lt.s32.totalorder %s1363_s18, 3 }
  0x11   : > { %s1577_s20 = scalar_lea.vmem %s1906_s0, %s1362_s15  ;;  %909 = vmatprep.subr.bf16.mxu1 %v1440_v13  ;;  %v1464_v44 = vld [vmem:[%s1909_s3 + $0xa4] ss:$8 sps:$4 sm:$0xff]   ;;  %v1466_v45 = vld [vmem:[%s1909_s3 + $0xa0] ss:$8 sps:$4 sm:$0xff]   ;;  %v1467_v46 = vld [vmem:[%s1909_s3 + $0xb4] ss:$8 sps:$4 sm:$0xff]  }
  0x12   : > { %v283_v14 = vld [vmem:[%s1577_s20] sm:$0xff]  ;;  %v284_v15 = vld [vmem:[%s1577_s20 + $0x8] sm:$0xff]  ;;  %v285_v19 = vld [vmem:[%s1577_s20 + $0x10] sm:$0xff]  ;;  %s1917_s18 = smov (!%p278_p4, %s1363_s18), 3 }
  0x13   : > { %v315_v16 = vpack.c.bf16 %v284_v15, %v283_v14  ;;  %v286_v20 = vld [vmem:[%s1577_s20 + $0x18] sm:$0xff]  ;;  %v287_v25 = vld [vmem:[%s1577_s20 + $0x20] sm:$0xff]  ;;  %v288_v27 = vld [vmem:[%s1577_s20 + $0x28] sm:$0xff]  ;;  %s280_s22 = scalar_lea.vmem %s1913_s7, %s1917_s18 }
  0x14   : > { %910 = vmatpush1.bf16.msra.mxu1 %v1442_v17  ;;  %v316_v22 = vpack.c.bf16 %v286_v20, %v285_v19  ;;  %v317_v29 = vpack.c.bf16 %v288_v27, %v287_v25  ;;  %v289_v32 = vld [vmem:[%s1577_s20 + $0x30] sm:$0xff]  ;;  %v290_v34 = vld [vmem:[%s1577_s20 + $0x38] sm:$0xff]  ;;  %v291_v40 = vld [vmem:[%s1577_s20 + $0x40] sm:$0xff] }
  0x15   : > { %1366 = vmatmul.mubr.msk.bf16.vlgmr.msra.gmra.mrb[0].mxu0 %vm353_vm2, %v315_v16  ;;  %911 = vmatprep.subr.bf16.mxu1 %v1443_v18  ;;  %v318_v37 = vpack.c.bf16 %v290_v34, %v289_v32  ;;  %v292_v41 = vld [vmem:[%s1577_s20 + $0x48] sm:$0xff]  ;;  %v293_v47 = vld [vmem:[%s1577_s20 + $0x50] sm:$0xff]  ;;  %v294_v48 = vld [vmem:[%s1577_s20 + $0x58] sm:$0xff] }
  0x16   : > { %454 = vmatprep.mubr.bf16.mxu0 %v1499_v6  ;;  %v319_v43 = vpack.c.bf16 %v292_v41, %v291_v40  ;;  %v1469_v49 = vld [vmem:[%s1909_s3 + $0xb0] ss:$8 sps:$4 sm:$0xff]   ;;  %v320_v50 = vpack.c.bf16 %v294_v48, %v293_v47  ;;  %v1470_v51 = vld [vmem:[%s1909_s3 + $0xc4] ss:$8 sps:$4 sm:$0xff]   ;;  %v1472_v52 = vld [vmem:[%s1909_s3 + $0xc0] ss:$8 sps:$4 sm:$0xff]  }
  0x17   : > { %v1473_v53 = vld [vmem:[%s1909_s3 + $0xd4] ss:$8 sps:$4 sm:$0xff]   ;;  %v295_v54 = vld [vmem:[%s1577_s20 + $0x60] sm:$0xff]  ;;  %v296_v55 = vld [vmem:[%s1577_s20 + $0x68] sm:$0xff] }
  0x18   : > { %912 = vmatpush1.bf16.msra.mxu1 %v1445_v21  ;;  %v321_v56 = vpack.c.bf16 %v296_v55, %v295_v54  ;;  %v297_v57 = vld [vmem:[%s1577_s20 + $0x70] sm:$0xff]  ;;  %v298_v58 = vld [vmem:[%s1577_s20 + $0x78] sm:$0xff]  ;;  %v299_v60 = vld [vmem:[%s1577_s20 + $0x80] sm:$0xff] }
  0x19   : > { %913 = vmatprep.subr.bf16.mxu1 %v1446_v23  ;;  %v322_v59 = vpack.c.bf16 %v298_v58, %v297_v57  ;;  %v300_v61 = vld [vmem:[%s1577_s20 + $0x88] sm:$0xff]  ;;  %v301_v63 = vld [vmem:[%s1577_s20 + $0x90] sm:$0xff]  ;;  %v302_v0 = vld [vmem:[%s1577_s20 + $0x98] sm:$0xff] }
  0x1a   : > { %v323_v62 = vpack.c.bf16 %v300_v61, %v299_v60  ;;  %v324_v1 = vpack.c.bf16 %v302_v0, %v301_v63  ;;  %v303_v2 = vld [vmem:[%s1577_s20 + $0xa0] sm:$0xff]  ;;  %v304_v3 = vld [vmem:[%s1577_s20 + $0xa8] sm:$0xff]  ;;  %v305_v5 = vld [vmem:[%s1577_s20 + $0xb0] sm:$0xff] }
  0x1b   : > { %v325_v4 = vpack.c.bf16 %v304_v3, %v303_v2  ;;  %v306_v7 = vld [vmem:[%s1577_s20 + $0xb8] sm:$0xff]  ;;  %v1476_v10 = vld [vmem:[%s1909_s3 + $0xe4] ss:$8 sps:$4 sm:$0xff]   ;;  %v1478_v11 = vld [vmem:[%s1909_s3 + $0xe0] ss:$8 sps:$4 sm:$0xff]  }
  0x1c   : > { %914 = vmatpush1.bf16.msra.mxu1 %v1448_v24  ;;  %v1475_v8 = vld [vmem:[%s1909_s3 + $0xd0] ss:$8 sps:$4 sm:$0xff]   ;;  %v326_v9 = vpack.c.bf16 %v306_v7, %v305_v5  ;;  %v1479_v12 = vld [vmem:[%s1909_s3 + $0xf4] ss:$8 sps:$4 sm:$0xff]   ;;  %v307_v13 = vld [vmem:[%s1577_s20 + $0xc0] sm:$0xff] }
  0x1d   : > { %1367 = vmatmul.mubr.msk.bf16.gmra.mrb[4].mxu0 %vm353_vm2, %v316_v22  ;;  %915 = vmatprep.subr.bf16.mxu1 %v1449_v26  ;;  %v308_v14 = vld [vmem:[%s1577_s20 + $0xc8] sm:$0xff]  ;;  %v1481_v15 = vld [vmem:[%s1909_s3 + $0xf0] ss:$8 sps:$4 sm:$0xff]   ;;  %v311_v20 = vld [vmem:[%s1577_s20 + $0xe0] sm:$0xff]  ;;  %v335_v26 = vlaneseq }
  0x1e   : > { %464 = vmatprep.mubr.bf16.mxu0 %v1499_v6  ;;  %v327_v16 = vpack.c.bf16 %v308_v14, %v307_v13  ;;  %v309_v17 = vld [vmem:[%s1577_s20 + $0xd0] sm:$0xff]  ;;  %v310_v18 = vld [vmem:[%s1577_s20 + $0xd8] sm:$0xff]  ;;  %v312_v21 = vld [vmem:[%s1577_s20 + $0xe8] sm:$0xff] }
  0x1f   : > { %v328_v19 = vpack.c.bf16 %v310_v18, %v309_v17  ;;  %v329_v22 = vpack.c.bf16 %v312_v21, %v311_v20  ;;  %v313_v23 = vld [vmem:[%s1577_s20 + $0xf0] sm:$0xff]  ;;  %v314_v24 = vld [vmem:[%s1577_s20 + $0xf8] sm:$0xff]  ;;  %v1727_v27 = vshrl.u32 %v335_v26, 7  ;;  %vm1303_vm3 = vcmp.lt.s32.totalorder %v335_v26, 256 }
  0x20   : > { %916 = vmatpush1.bf16.msra.mxu1 %v1451_v28  ;;  %v330_v25 = vpack.c.bf16 %v314_v24, %v313_v23 }
  0x21   : > { %917 = vmatprep.subr.bf16.mxu1 %v1452_v30  ;;  %v1730_v28 = vsub.s32 0, %v1727_v27  ;;  %v341_v30 = vsub.s32 1, %v1727_v27 }
  0x24   : > { %918 = vmatpush1.bf16.msra.mxu1 %v1454_v31 }
  0x25   : > { %1368 = vmatmul.mubr.msk.bf16.gmra.mrb[8].mxu0 %vm353_vm2, %v317_v29  ;;  %919 = vmatprep.subr.bf16.mxu1 %v1455_v33  ;;  %v333_v29 = vld [vmem:[%s1908_s2] sm:$0x3] }
  0x26   : > { %474 = vmatprep.mubr.bf16.mxu0 %v1499_v6  ;;  %v1741_v31 = vrot.slane %v333_v29, %v341_v30 }
  0x28   : > { %920 = vmatpush1.bf16.msra.mxu1 %v1457_v35 }
  0x29   : > { %921 = vmatprep.subr.bf16.mxu1 %v1458_v36 }
  0x2c   : > { %922 = vmatpush1.bf16.msra.mxu1 %v1460_v38 }
  0x2d   : > { %1369 = vmatmul.mubr.msk.bf16.gmra.mrb[12].mxu0 %vm353_vm2, %v318_v37  ;;  %923 = vmatprep.subr.bf16.mxu1 %v1461_v39 }
  0x2e   : > { %484 = vmatprep.mubr.bf16.mxu0 %v1499_v6 }
  0x30   : > { %924 = vmatpush1.bf16.msra.mxu1 %v1463_v42 }
  0x31   : > { %925 = vmatprep.subr.bf16.mxu1 %v1464_v44 }
  0x34   : > { %926 = vmatpush1.bf16.msra.mxu1 %v1466_v45 }
  0x35   : > { %1370 = vmatmul.mubr.msk.bf16.gmra.mrb[16].mxu0 %vm353_vm2, %v319_v43  ;;  %927 = vmatprep.subr.bf16.mxu1 %v1467_v46 }
  0x36   : > { %494 = vmatprep.mubr.bf16.mxu0 %v1499_v6 }
  0x38   : > { %928 = vmatpush1.bf16.msra.mxu1 %v1469_v49 }
  0x39   : > { %929 = vmatprep.subr.bf16.mxu1 %v1470_v51 }
  0x3c   : > { %930 = vmatpush1.bf16.msra.mxu1 %v1472_v52 }
  0x3d   : > { %1371 = vmatmul.mubr.msk.bf16.gmra.mrb[20].mxu0 %vm353_vm2, %v320_v50  ;;  %931 = vmatprep.subr.bf16.mxu1 %v1473_v53 }
  0x3e   : > { %504 = vmatprep.mubr.bf16.mxu0 %v1499_v6 }
  0x40   : > { %932 = vmatpush1.bf16.msra.mxu1 %v1475_v8 }
  0x41   : > { %933 = vmatprep.subr.bf16.mxu1 %v1476_v10 }
  0x44   : > { %934 = vmatpush1.bf16.msra.mxu1 %v1478_v11 }
  0x45   : > { %1372 = vmatmul.mubr.msk.bf16.gmra.mrb[24].mxu0 %vm353_vm2, %v321_v56  ;;  %935 = vmatprep.subr.bf16.mxu1 %v1479_v12 }
  0x46   : > { %514 = vmatprep.mubr.bf16.mxu0 %v1499_v6 }
  0x48   : > { %936 = vmatpush1.bf16.msra.mxu1 %v1481_v15 }
  0x4d   : > { %1373 = vmatmul.mubr.msk.bf16.gmra.mrb[28].mxu0 %vm353_vm2, %v322_v59 }
  0x4e   : > { %524 = vmatprep.mubr.bf16.mxu0 %v1499_v6 }
  0x55   : > { %1374 = vmatmul.mubr.msk.bf16.gmra.mrb[32].mxu0 %vm353_vm2, %v323_v62 }
  0x56   : > { %534 = vmatprep.mubr.bf16.mxu0 %v1499_v6 }
  0x5d   : > { %1375 = vmatmul.mubr.msk.bf16.gmra.mrb[36].mxu0 %vm353_vm2, %v324_v1 }
  0x5e   : > { %544 = vmatprep.mubr.bf16.mxu0 %v1499_v6 }
  0x65   : > { %1376 = vmatmul.mubr.msk.bf16.gmra.mrb[40].mxu0 %vm353_vm2, %v325_v4 }
  0x66   : > { %554 = vmatprep.mubr.bf16.mxu0 %v1499_v6 }
  0x6d   : > { %1377 = vmatmul.mubr.msk.bf16.gmra.mrb[44].mxu0 %vm353_vm2, %v326_v9 }
  0x6e   : > { %564 = vmatprep.mubr.bf16.mxu0 %v1499_v6 }
  0x75   : > { %1378 = vmatmul.mubr.msk.bf16.gmra.mrb[48].mxu0 %vm353_vm2, %v327_v16 }
  0x76   : > { %574 = vmatprep.mubr.bf16.mxu0 %v1499_v6 }
  0x7d   : > { %1379 = vmatmul.mubr.msk.bf16.gmra.mrb[52].mxu0 %vm353_vm2, %v328_v19 }
  0x7e   : > { %584 = vmatprep.mubr.bf16.mxu0 %v1499_v6 }
  0x85   : > { %1380 = vmatmul.mubr.msk.bf16.gmra.mrb[56].mxu0 %vm353_vm2, %v329_v22 }
  0x86   : > { %594 = vmatprep.mubr.bf16.mxu0 %v1499_v6  ;;  %v1737_v6 = vrot.slane %v333_v29, %v1730_v28 }
  0x8d   : > { %1381 = vmatmul.mubr.msk.bf16.gmra.mrb[60].mxu0 %vm353_vm2, %v330_v25 }
  0xe8   : > { %v446_v32 = vpop.f32.mrb[0].mxu0 }
  0xe9   : > { %v447_v33 = vadd.f32 %v446_v32, %v1737_v6  ;;  %v448_v34 = vpop.f32.mrb[1].mxu0 }
  0xea   : > { %v449_v35 = vadd.f32 %v448_v34, %v1741_v31  ;;  %v450_v36 = vpop.f32.mrb[2].mxu0 }
  0xeb   : > { %v451_v37 = vadd.f32 %v450_v36, %v1737_v6  ;;  %v452_v38 = vpop.f32.mrb[3].mxu0  ;;  %v605_v40 = vmax.f32 %v447_v33, 0.0 }
  0xec   : > { %v453_v39 = vadd.f32 %v452_v38, %v1741_v31  ;;  %v606_v42 = vmax.f32 %v449_v35, 0.0 }
  0xed   : > { %v607_v41 = vmax.f32 %v451_v37, 0.0 }
  0xee   : > { %v608_v43 = vmax.f32 %v453_v39, 0.0 }
  0xef   : > { %v669_v44 = vpack.c.bf16 %v607_v41, %v605_v40 }
  0xf0   : > { %v456_v45 = vpop.f32.mrb[4].mxu0  ;;  %v670_v46 = vpack.c.bf16 %v608_v43, %v606_v42 }
  0xf1   : > { %v457_v47 = vadd.f32 %v456_v45, %v1737_v6  ;;  %v458_v48 = vpop.f32.mrb[5].mxu0 }
  0xf2   : > { %v459_v49 = vadd.f32 %v458_v48, %v1741_v31  ;;  %v460_v50 = vpop.f32.mrb[6].mxu0  ;;  %937 = vmatprep.mubr.bf16.mxu1 %v670_v46 }
  0xf3   : > { %v461_v51 = vadd.f32 %v460_v50, %v1737_v6  ;;  %v462_v52 = vpop.f32.mrb[7].mxu0  ;;  %938 = vmatmul.mubr.bf16.vlgmr.msra.gmra.mrb[0].mxu1 %v669_v44  ;;  %v609_v54 = vmax.f32 %v457_v47, 0.0 }
  0xf4   : > { %v463_v53 = vadd.f32 %v462_v52, %v1741_v31  ;;  %v610_v56 = vmax.f32 %v459_v49, 0.0 }
  0xf5   : > { %v611_v55 = vmax.f32 %v461_v51, 0.0 }
  0xf6   : > { %v612_v57 = vmax.f32 %v463_v53, 0.0 }
  0xf7   : > { %v671_v58 = vpack.c.bf16 %v611_v55, %v609_v54 }
  0xf8   : > { %v672_v59 = vpack.c.bf16 %v612_v57, %v610_v56  ;;  %v466_v60 = vpop.f32.mrb[8].mxu0 }
  0xf9   : > { %v467_v61 = vadd.f32 %v466_v60, %v1737_v6  ;;  %v468_v62 = vpop.f32.mrb[9].mxu0 }
  0xfa   : > { %v469_v63 = vadd.f32 %v468_v62, %v1741_v31  ;;  %v470_v0 = vpop.f32.mrb[10].mxu0  ;;  %947 = vmatprep.mubr.bf16.mxu1 %v672_v59 }
  0xfb   : > { %v471_v1 = vadd.f32 %v470_v0, %v1737_v6  ;;  %v472_v2 = vpop.f32.mrb[11].mxu0  ;;  %948 = vmatmul.mubr.bf16.gmra.mrb[4].mxu1 %v671_v58  ;;  %v613_v4 = vmax.f32 %v467_v61, 0.0 }
  0xfc   : > { %v473_v3 = vadd.f32 %v472_v2, %v1741_v31  ;;  %v614_v7 = vmax.f32 %v469_v63, 0.0 }
  0xfd   : > { %v615_v5 = vmax.f32 %v471_v1, 0.0 }
  0xfe   : > { %v616_v8 = vmax.f32 %v473_v3, 0.0 }
  0xff   : > { %v673_v9 = vpack.c.bf16 %v615_v5, %v613_v4 }
 0x100   : > { %v674_v10 = vpack.c.bf16 %v616_v8, %v614_v7  ;;  %v476_v11 = vpop.f32.mrb[12].mxu0 }
 0x101   : > { %v477_v12 = vadd.f32 %v476_v11, %v1737_v6  ;;  %v478_v13 = vpop.f32.mrb[13].mxu0 }
 0x102   : > { %v479_v14 = vadd.f32 %v478_v13, %v1741_v31  ;;  %v480_v15 = vpop.f32.mrb[14].mxu0  ;;  %957 = vmatprep.mubr.bf16.mxu1 %v674_v10 }
 0x103   : > { %v481_v16 = vadd.f32 %v480_v15, %v1737_v6  ;;  %v482_v17 = vpop.f32.mrb[15].mxu0  ;;  %958 = vmatmul.mubr.bf16.gmra.mrb[8].mxu1 %v673_v9  ;;  %v617_v19 = vmax.f32 %v477_v12, 0.0 }
 0x104   : > { %v483_v18 = vadd.f32 %v482_v17, %v1741_v31  ;;  %v618_v21 = vmax.f32 %v479_v14, 0.0 }
 0x105   : > { %v619_v20 = vmax.f32 %v481_v16, 0.0 }
 0x106   : > { %v620_v22 = vmax.f32 %v483_v18, 0.0 }
 0x107   : > { %v675_v23 = vpack.c.bf16 %v619_v20, %v617_v19 }
 0x108   : > { %v676_v24 = vpack.c.bf16 %v620_v22, %v618_v21  ;;  %v486_v25 = vpop.f32.mrb[16].mxu0 }
 0x109   : > { %v487_v29 = vadd.f32 %v486_v25, %v1737_v6  ;;  %v488_v32 = vpop.f32.mrb[17].mxu0 }
 0x10a   : > { %v489_v33 = vadd.f32 %v488_v32, %v1741_v31  ;;  %v490_v34 = vpop.f32.mrb[18].mxu0  ;;  %967 = vmatprep.mubr.bf16.mxu1 %v676_v24 }
 0x10b   : > { %v491_v35 = vadd.f32 %v490_v34, %v1737_v6  ;;  %v492_v36 = vpop.f32.mrb[19].mxu0  ;;  %968 = vmatmul.mubr.bf16.gmra.mrb[12].mxu1 %v675_v23  ;;  %v621_v38 = vmax.f32 %v487_v29, 0.0 }
 0x10c   : > { %v493_v37 = vadd.f32 %v492_v36, %v1741_v31  ;;  %v622_v40 = vmax.f32 %v489_v33, 0.0 }
 0x10d   : > { %v623_v39 = vmax.f32 %v491_v35, 0.0 }
 0x10e   : > { %v624_v41 = vmax.f32 %v493_v37, 0.0 }
 0x10f   : > { %v677_v42 = vpack.c.bf16 %v623_v39, %v621_v38 }
 0x110   : > { %v678_v43 = vpack.c.bf16 %v624_v41, %v622_v40  ;;  %v496_v44 = vpop.f32.mrb[20].mxu0 }
 0x111   : > { %v497_v45 = vadd.f32 %v496_v44, %v1737_v6  ;;  %v498_v46 = vpop.f32.mrb[21].mxu0 }
 0x112   : > { %v499_v47 = vadd.f32 %v498_v46, %v1741_v31  ;;  %v500_v48 = vpop.f32.mrb[22].mxu0  ;;  %977 = vmatprep.mubr.bf16.mxu1 %v678_v43 }
 0x113   : > { %v501_v49 = vadd.f32 %v500_v48, %v1737_v6  ;;  %v502_v50 = vpop.f32.mrb[23].mxu0  ;;  %978 = vmatmul.mubr.bf16.gmra.mrb[16].mxu1 %v677_v42  ;;  %v625_v52 = vmax.f32 %v497_v45, 0.0 }
 0x114   : > { %v503_v51 = vadd.f32 %v502_v50, %v1741_v31  ;;  %v626_v54 = vmax.f32 %v499_v47, 0.0 }
 0x115   : > { %v627_v53 = vmax.f32 %v501_v49, 0.0 }
 0x116   : > { %v628_v55 = vmax.f32 %v503_v51, 0.0 }
 0x117   : > { %v679_v56 = vpack.c.bf16 %v627_v53, %v625_v52 }
 0x118   : > { %v680_v57 = vpack.c.bf16 %v628_v55, %v626_v54  ;;  %v506_v58 = vpop.f32.mrb[24].mxu0 }
 0x119   : > { %v507_v59 = vadd.f32 %v506_v58, %v1737_v6  ;;  %v508_v60 = vpop.f32.mrb[25].mxu0 }
 0x11a   : > { %v509_v61 = vadd.f32 %v508_v60, %v1741_v31  ;;  %v510_v62 = vpop.f32.mrb[26].mxu0  ;;  %987 = vmatprep.mubr.bf16.mxu1 %v680_v57 }
 0x11b   : > { %v511_v63 = vadd.f32 %v510_v62, %v1737_v6  ;;  %v512_v0 = vpop.f32.mrb[27].mxu0  ;;  %988 = vmatmul.mubr.bf16.gmra.mrb[20].mxu1 %v679_v56  ;;  %v629_v2 = vmax.f32 %v507_v59, 0.0 }
 0x11c   : > { %v513_v1 = vadd.f32 %v512_v0, %v1741_v31  ;;  %v630_v4 = vmax.f32 %v509_v61, 0.0 }
 0x11d   : > { %v631_v3 = vmax.f32 %v511_v63, 0.0 }
 0x11e   : > { %v632_v5 = vmax.f32 %v513_v1, 0.0 }
 0x11f   : > { %v681_v7 = vpack.c.bf16 %v631_v3, %v629_v2 }
 0x120   : > { %v682_v8 = vpack.c.bf16 %v632_v5, %v630_v4  ;;  %v516_v9 = vpop.f32.mrb[28].mxu0 }
 0x121   : > { %v517_v10 = vadd.f32 %v516_v9, %v1737_v6  ;;  %v518_v11 = vpop.f32.mrb[29].mxu0 }
 0x122   : > { %v519_v12 = vadd.f32 %v518_v11, %v1741_v31  ;;  %v520_v13 = vpop.f32.mrb[30].mxu0  ;;  %997 = vmatprep.mubr.bf16.mxu1 %v682_v8 }
 0x123   : > { %v521_v14 = vadd.f32 %v520_v13, %v1737_v6  ;;  %v522_v15 = vpop.f32.mrb[31].mxu0  ;;  %998 = vmatmul.mubr.bf16.gmra.mrb[24].mxu1 %v681_v7  ;;  %v633_v17 = vmax.f32 %v517_v10, 0.0 }
 0x124   : > { %v523_v16 = vadd.f32 %v522_v15, %v1741_v31  ;;  %v634_v19 = vmax.f32 %v519_v12, 0.0 }
 0x125   : > { %v635_v18 = vmax.f32 %v521_v14, 0.0 }
 0x126   : > { %v636_v20 = vmax.f32 %v523_v16, 0.0 }
 0x127   : > { %v683_v21 = vpack.c.bf16 %v635_v18, %v633_v17 }
 0x128   : > { %v684_v22 = vpack.c.bf16 %v636_v20, %v634_v19  ;;  %v526_v23 = vpop.f32.mrb[32].mxu0 }
 0x129   : > { %v527_v24 = vadd.f32 %v526_v23, %v1737_v6  ;;  %v528_v25 = vpop.f32.mrb[33].mxu0 }
 0x12a   : > { %v529_v29 = vadd.f32 %v528_v25, %v1741_v31  ;;  %v530_v32 = vpop.f32.mrb[34].mxu0  ;;  %1007 = vmatprep.mubr.bf16.mxu1 %v684_v22 }
 0x12b   : > { %v531_v33 = vadd.f32 %v530_v32, %v1737_v6  ;;  %v532_v34 = vpop.f32.mrb[35].mxu0  ;;  %1008 = vmatmul.mubr.bf16.gmra.mrb[28].mxu1 %v683_v21  ;;  %v637_v36 = vmax.f32 %v527_v24, 0.0 }
 0x12c   : > { %v533_v35 = vadd.f32 %v532_v34, %v1741_v31  ;;  %v638_v38 = vmax.f32 %v529_v29, 0.0 }
 0x12d   : > { %v639_v37 = vmax.f32 %v531_v33, 0.0 }
 0x12e   : > { %v640_v39 = vmax.f32 %v533_v35, 0.0 }
 0x12f   : > { %v685_v40 = vpack.c.bf16 %v639_v37, %v637_v36 }
 0x130   : > { %v686_v41 = vpack.c.bf16 %v640_v39, %v638_v38  ;;  %v536_v42 = vpop.f32.mrb[36].mxu0 }
 0x131   : > { %v537_v43 = vadd.f32 %v536_v42, %v1737_v6  ;;  %v538_v44 = vpop.f32.mrb[37].mxu0 }
 0x132   : > { %v539_v45 = vadd.f32 %v538_v44, %v1741_v31  ;;  %v540_v46 = vpop.f32.mrb[38].mxu0  ;;  %1017 = vmatprep.mubr.bf16.mxu1 %v686_v41 }
 0x133   : > { %v541_v47 = vadd.f32 %v540_v46, %v1737_v6  ;;  %v542_v48 = vpop.f32.mrb[39].mxu0  ;;  %1018 = vmatmul.mubr.bf16.gmra.mrb[32].mxu1 %v685_v40  ;;  %v641_v50 = vmax.f32 %v537_v43, 0.0 }
 0x134   : > { %v543_v49 = vadd.f32 %v542_v48, %v1741_v31  ;;  %v642_v52 = vmax.f32 %v539_v45, 0.0 }
 0x135   : > { %v643_v51 = vmax.f32 %v541_v47, 0.0 }
 0x136   : > { %v644_v53 = vmax.f32 %v543_v49, 0.0 }
 0x137   : > { %v687_v54 = vpack.c.bf16 %v643_v51, %v641_v50 }
 0x138   : > { %v688_v55 = vpack.c.bf16 %v644_v53, %v642_v52  ;;  %v546_v56 = vpop.f32.mrb[40].mxu0 }
 0x139   : > { %v547_v57 = vadd.f32 %v546_v56, %v1737_v6  ;;  %v548_v58 = vpop.f32.mrb[41].mxu0 }
 0x13a   : > { %v549_v59 = vadd.f32 %v548_v58, %v1741_v31  ;;  %v550_v60 = vpop.f32.mrb[42].mxu0  ;;  %1027 = vmatprep.mubr.bf16.mxu1 %v688_v55 }
 0x13b   : > { %v551_v61 = vadd.f32 %v550_v60, %v1737_v6  ;;  %v552_v62 = vpop.f32.mrb[43].mxu0  ;;  %1028 = vmatmul.mubr.bf16.gmra.mrb[36].mxu1 %v687_v54  ;;  %v645_v0 = vmax.f32 %v547_v57, 0.0 }
 0x13c   : > { %v553_v63 = vadd.f32 %v552_v62, %v1741_v31  ;;  %v646_v2 = vmax.f32 %v549_v59, 0.0 }
 0x13d   : > { %v647_v1 = vmax.f32 %v551_v61, 0.0 }
 0x13e   : > { %v648_v3 = vmax.f32 %v553_v63, 0.0 }
 0x13f   : > { %v689_v4 = vpack.c.bf16 %v647_v1, %v645_v0 }
 0x140   : > { %v690_v5 = vpack.c.bf16 %v648_v3, %v646_v2  ;;  %v556_v7 = vpop.f32.mrb[44].mxu0 }
 0x141   : > { %v557_v8 = vadd.f32 %v556_v7, %v1737_v6  ;;  %v558_v9 = vpop.f32.mrb[45].mxu0 }
 0x142   : > { %v559_v10 = vadd.f32 %v558_v9, %v1741_v31  ;;  %v560_v11 = vpop.f32.mrb[46].mxu0  ;;  %1037 = vmatprep.mubr.bf16.mxu1 %v690_v5 }
 0x143   : > { %v561_v12 = vadd.f32 %v560_v11, %v1737_v6  ;;  %v562_v13 = vpop.f32.mrb[47].mxu0  ;;  %1038 = vmatmul.mubr.bf16.gmra.mrb[40].mxu1 %v689_v4  ;;  %v649_v15 = vmax.f32 %v557_v8, 0.0 }
 0x144   : > { %v563_v14 = vadd.f32 %v562_v13, %v1741_v31  ;;  %v650_v17 = vmax.f32 %v559_v10, 0.0 }
 0x145   : > { %v651_v16 = vmax.f32 %v561_v12, 0.0 }
 0x146   : > { %v652_v18 = vmax.f32 %v563_v14, 0.0 }
 0x147   : > { %v691_v19 = vpack.c.bf16 %v651_v16, %v649_v15 }
 0x148   : > { %v692_v20 = vpack.c.bf16 %v652_v18, %v650_v17  ;;  %v566_v21 = vpop.f32.mrb[48].mxu0 }
 0x149   : > { %v567_v22 = vadd.f32 %v566_v21, %v1737_v6  ;;  %v568_v23 = vpop.f32.mrb[49].mxu0 }
 0x14a   : > { %v569_v24 = vadd.f32 %v568_v23, %v1741_v31  ;;  %v570_v25 = vpop.f32.mrb[50].mxu0  ;;  %1047 = vmatprep.mubr.bf16.mxu1 %v692_v20  ;;  %v1500_v23 = vmov 1966171168  }
 0x14b   : > { %v571_v29 = vadd.f32 %v570_v25, %v1737_v6  ;;  %v572_v32 = vpop.f32.mrb[51].mxu0  ;;  %1048 = vmatmul.mubr.bf16.gmra.mrb[44].mxu1 %v691_v19  ;;  %v653_v34 = vmax.f32 %v567_v22, 0.0  ;;  %v733_v19 = vld [vmem:[%s1910_s4] sm:$0x3] }
 0x14c   : > { %v573_v33 = vadd.f32 %v572_v32, %v1741_v31  ;;  %v654_v36 = vmax.f32 %v569_v24, 0.0  ;;  %v1811_v20 = vrot.slane %v733_v19, %v1730_v28  ;;  %v1215_v24 = vunpack.c.l.s4 %v1500_v23 }
 0x14d   : > { %v655_v35 = vmax.f32 %v571_v29, 0.0 }
 0x14e   : > { %v656_v37 = vmax.f32 %v573_v33, 0.0 }
 0x14f   : > { %v693_v38 = vpack.c.bf16 %v655_v35, %v653_v34  ;;  %v1823_v34 = vld.sshfl [vmem:[%s1911_s5] sm:$0x11 pattern:$0x75316420]  ;;  %v1216_v35 = vunpack.c.0.s8 %v1215_v24 }
 0x150   : > { %v694_v39 = vpack.c.bf16 %v656_v37, %v654_v36  ;;  %v576_v40 = vpop.f32.mrb[52].mxu0  ;;  %v1213_v36 = vcombine.high %v1823_v34, %v1823_v34 }
 0x151   : > { %v577_v41 = vadd.f32 %v576_v40, %v1737_v6  ;;  %v578_v42 = vpop.f32.mrb[53].mxu0 }
 0x152   : > { %v579_v43 = vadd.f32 %v578_v42, %v1741_v31  ;;  %v580_v44 = vpop.f32.mrb[54].mxu0  ;;  %1057 = vmatprep.mubr.bf16.mxu1 %v694_v39  ;;  %v1829_v39 = vsub.s32 %v1216_v35, %v1727_v27 }
 0x153   : > { %v581_v45 = vadd.f32 %v580_v44, %v1737_v6  ;;  %v582_v46 = vpop.f32.mrb[55].mxu0  ;;  %1058 = vmatmul.mubr.bf16.gmra.mrb[48].mxu1 %v693_v38  ;;  %v657_v48 = vmax.f32 %v577_v41, 0.0 }
 0x154   : > { %v583_v47 = vadd.f32 %v582_v46, %v1741_v31  ;;  %v658_v50 = vmax.f32 %v579_v43, 0.0  ;;  %v1227_v43 = vrot.slane %v1213_v36, %v1829_v39 }
 0x155   : > { %v659_v49 = vmax.f32 %v581_v45, 0.0 }
 0x156   : > { %v660_v51 = vmax.f32 %v583_v47, 0.0  ;;  %1262 = vmatprep.mubr.bf16.mxu0 %v1227_v43 }
 0x157   : > { %v695_v52 = vpack.c.bf16 %v659_v49, %v657_v48 }
 0x158   : > { %v696_v53 = vpack.c.bf16 %v660_v51, %v658_v50  ;;  %v586_v54 = vpop.f32.mrb[56].mxu0  ;;  %v1195_v50 = vld [vmem:[#allocation2] sm:$0x1] }
 0x159   : > { %v587_v55 = vadd.f32 %v586_v54, %v1737_v6  ;;  %v588_v56 = vpop.f32.mrb[57].mxu0  ;;  %1198 = vperm.xlu0 %1430, %v1195_v50  }
 0x15a   : > { %v589_v57 = vadd.f32 %v588_v56, %v1741_v31  ;;  %v590_v58 = vpop.f32.mrb[58].mxu0  ;;  %1067 = vmatprep.mubr.bf16.mxu1 %v696_v53 }
 0x15b   : > { %v591_v59 = vadd.f32 %v590_v58, %v1737_v6  ;;  %v592_v60 = vpop.f32.mrb[59].mxu0  ;;  %1068 = vmatmul.mubr.bf16.gmra.mrb[52].mxu1 %v695_v52  ;;  %v661_v62 = vmax.f32 %v587_v55, 0.0 }
 0x15c   : > { %v593_v61 = vadd.f32 %v592_v60, %v1741_v31  ;;  %v662_v0 = vmax.f32 %v589_v57, 0.0 }
 0x15d   : > { %v663_v63 = vmax.f32 %v591_v59, 0.0 }
 0x15e   : > { %v664_v1 = vmax.f32 %v593_v61, 0.0 }
 0x15f   : > { %v697_v2 = vpack.c.bf16 %v663_v63, %v661_v62 }
 0x160   : > { %v698_v3 = vpack.c.bf16 %v664_v1, %v662_v0  ;;  %v596_v4 = vpop.f32.mrb[60].mxu0 }
 0x161   : > { %v597_v5 = vadd.f32 %v596_v4, %v1737_v6  ;;  %v598_v7 = vpop.f32.mrb[61].mxu0 }
 0x162   : > { %v599_v8 = vadd.f32 %v598_v7, %v1741_v31  ;;  %v600_v9 = vpop.f32.mrb[62].mxu0  ;;  %1077 = vmatprep.mubr.bf16.mxu1 %v698_v3 }
 0x163   : > { %v601_v10 = vadd.f32 %v600_v9, %v1737_v6  ;;  %v602_v11 = vpop.f32.mrb[63].mxu0  ;;  %1078 = vmatmul.mubr.bf16.gmra.mrb[56].mxu1 %v697_v2  ;;  %v665_v13 = vmax.f32 %v597_v5, 0.0  ;;  %v1815_v6 = vrot.slane %v733_v19, %v341_v30 }
 0x164   : > { %v603_v12 = vadd.f32 %v602_v11, %v1741_v31  ;;  %v666_v15 = vmax.f32 %v599_v8, 0.0 }
 0x165   : > { %v667_v14 = vmax.f32 %v601_v10, 0.0 }
 0x166   : > { %v668_v16 = vmax.f32 %v603_v12, 0.0 }
 0x167   : > { %v699_v17 = vpack.c.bf16 %v667_v14, %v665_v13 }
 0x168   : > { %v700_v18 = vpack.c.bf16 %v668_v16, %v666_v15 }
 0x16a   : > { %1087 = vmatprep.mubr.bf16.mxu1 %v700_v18 }
 0x16b   : > { %1088 = vmatmul.mubr.bf16.gmra.mrb[60].mxu1 %v699_v17 }
 0x1c6   : > { %v939_v31 = vpop.f32.mrb[0].mxu1 }
 0x1c7   : > { %v940_v21 = vadd.f32 %v939_v31, %v1811_v20  ;;  %v941_v22 = vpop.f32.mrb[1].mxu1 }
 0x1c8   : > { %v942_v25 = vadd.f32 %v941_v22, %v1815_v6  ;;  %v943_v29 = vpop.f32.mrb[2].mxu1 }
 0x1c9   : > { %v944_v32 = vadd.f32 %v943_v29, %v1811_v20  ;;  %v945_v33 = vpop.f32.mrb[3].mxu1  ;;  %v1098_v37 = vmax.f32 %v940_v21, 0.0 }
 0x1ca   : > { %v946_v30 = vadd.f32 %v945_v33, %v1815_v6  ;;  %v1099_v40 = vmax.f32 %v942_v25, 0.0 }
 0x1cb   : > { %v1100_v38 = vmax.f32 %v944_v32, 0.0 }
 0x1cc   : > { %v1101_v41 = vmax.f32 %v946_v30, 0.0 }
 0x1cd   : > { %v1162_v42 = vpack.c.bf16 %v1100_v38, %v1098_v37 }
 0x1ce   : > { %v1163_v44 = vpack.c.bf16 %v1101_v41, %v1099_v40  ;;  %v949_v45 = vpop.f32.mrb[4].mxu1 }
 0x1cf   : > { %v950_v46 = vadd.f32 %v949_v45, %v1811_v20  ;;  %v951_v47 = vpop.f32.mrb[5].mxu1 }
 0x1d0   : > { %v952_v48 = vadd.f32 %v951_v47, %v1815_v6  ;;  %v953_v49 = vpop.f32.mrb[6].mxu1  ;;  %1230 = vmatprep.subr.bf16.mxu0 %v1163_v44 }
 0x1d1   : > { %v954_v51 = vadd.f32 %v953_v49, %v1811_v20  ;;  %v955_v27 = vpop.f32.mrb[7].mxu1  ;;  %1231 = vmatpush1.bf16.xpose.msra.mxu0 %v1162_v42  ;;  %v1102_v53 = vmax.f32 %v950_v46, 0.0 }
 0x1d2   : > { %v956_v52 = vadd.f32 %v955_v27, %v1815_v6  ;;  %v1103_v55 = vmax.f32 %v952_v48, 0.0 }
 0x1d3   : > { %v1104_v54 = vmax.f32 %v954_v51, 0.0 }
 0x1d4   : > { %v1105_v56 = vmax.f32 %v956_v52, 0.0 }
 0x1d5   : > { %v1164_v57 = vpack.c.bf16 %v1104_v54, %v1102_v53 }
 0x1d6   : > { %v1165_v58 = vpack.c.bf16 %v1105_v56, %v1103_v55  ;;  %v959_v59 = vpop.f32.mrb[8].mxu1 }
 0x1d7   : > { %v960_v60 = vadd.f32 %v959_v59, %v1811_v20  ;;  %v961_v61 = vpop.f32.mrb[9].mxu1 }
 0x1d8   : > { %v962_v62 = vadd.f32 %v961_v61, %v1815_v6  ;;  %v963_v63 = vpop.f32.mrb[10].mxu1  ;;  %1232 = vmatprep.subr.bf16.mxu0 %v1165_v58 }
 0x1d9   : > { %v964_v0 = vadd.f32 %v963_v63, %v1811_v20  ;;  %v965_v1 = vpop.f32.mrb[11].mxu1  ;;  %1233 = vmatpush1.bf16.xpose.msra.mxu0 %v1164_v57  ;;  %v1106_v3 = vmax.f32 %v960_v60, 0.0 }
 0x1da   : > { %v966_v2 = vadd.f32 %v965_v1, %v1815_v6  ;;  %v1107_v5 = vmax.f32 %v962_v62, 0.0 }
 0x1db   : > { %v1108_v4 = vmax.f32 %v964_v0, 0.0 }
 0x1dc   : > { %v1109_v7 = vmax.f32 %v966_v2, 0.0 }
 0x1dd   : > { %v1166_v8 = vpack.c.bf16 %v1108_v4, %v1106_v3 }
 0x1de   : > { %v1167_v9 = vpack.c.bf16 %v1109_v7, %v1107_v5  ;;  %v969_v10 = vpop.f32.mrb[12].mxu1 }
 0x1df   : > { %v970_v11 = vadd.f32 %v969_v10, %v1811_v20  ;;  %v971_v12 = vpop.f32.mrb[13].mxu1 }
 0x1e0   : > { %v972_v13 = vadd.f32 %v971_v12, %v1815_v6  ;;  %v973_v14 = vpop.f32.mrb[14].mxu1  ;;  %1234 = vmatprep.subr.bf16.mxu0 %v1167_v9 }
 0x1e1   : > { %v974_v15 = vadd.f32 %v973_v14, %v1811_v20  ;;  %v975_v16 = vpop.f32.mrb[15].mxu1  ;;  %1235 = vmatpush1.bf16.xpose.msra.mxu0 %v1166_v8  ;;  %v1110_v18 = vmax.f32 %v970_v11, 0.0 }
 0x1e2   : > { %v976_v17 = vadd.f32 %v975_v16, %v1815_v6  ;;  %v1111_v31 = vmax.f32 %v972_v13, 0.0 }
 0x1e3   : > { %v1112_v19 = vmax.f32 %v974_v15, 0.0 }
 0x1e4   : > { %v1113_v21 = vmax.f32 %v976_v17, 0.0 }
 0x1e5   : > { %v1168_v22 = vpack.c.bf16 %v1112_v19, %v1110_v18 }
 0x1e6   : > { %v1169_v23 = vpack.c.bf16 %v1113_v21, %v1111_v31  ;;  %v979_v24 = vpop.f32.mrb[16].mxu1 }
 0x1e7   : > { %v980_v25 = vadd.f32 %v979_v24, %v1811_v20  ;;  %v981_v29 = vpop.f32.mrb[17].mxu1 }
 0x1e8   : > { %v982_v32 = vadd.f32 %v981_v29, %v1815_v6  ;;  %v983_v33 = vpop.f32.mrb[18].mxu1  ;;  %1236 = vmatprep.subr.bf16.mxu0 %v1169_v23 }
 0x1e9   : > { %v984_v35 = vadd.f32 %v983_v33, %v1811_v20  ;;  %v985_v30 = vpop.f32.mrb[19].mxu1  ;;  %1237 = vmatpush1.bf16.xpose.msra.mxu0 %v1168_v22  ;;  %v1114_v37 = vmax.f32 %v980_v25, 0.0 }
 0x1ea   : > { %v986_v36 = vadd.f32 %v985_v30, %v1815_v6  ;;  %v1115_v40 = vmax.f32 %v982_v32, 0.0 }
 0x1eb   : > { %v1116_v38 = vmax.f32 %v984_v35, 0.0 }
 0x1ec   : > { %v1117_v41 = vmax.f32 %v986_v36, 0.0 }
 0x1ed   : > { %v1170_v42 = vpack.c.bf16 %v1116_v38, %v1114_v37 }
 0x1ee   : > { %v1171_v43 = vpack.c.bf16 %v1117_v41, %v1115_v40  ;;  %v989_v44 = vpop.f32.mrb[20].mxu1 }
 0x1ef   : > { %v990_v45 = vadd.f32 %v989_v44, %v1811_v20  ;;  %v991_v46 = vpop.f32.mrb[21].mxu1 }
 0x1f0   : > { %v992_v47 = vadd.f32 %v991_v46, %v1815_v6  ;;  %v993_v48 = vpop.f32.mrb[22].mxu1  ;;  %1238 = vmatprep.subr.bf16.mxu0 %v1171_v43 }
 0x1f1   : > { %v994_v49 = vadd.f32 %v993_v48, %v1811_v20  ;;  %v995_v50 = vpop.f32.mrb[23].mxu1  ;;  %1239 = vmatpush1.bf16.xpose.msra.mxu0 %v1170_v42  ;;  %v1118_v27 = vmax.f32 %v990_v45, 0.0 }
 0x1f2   : > { %v996_v51 = vadd.f32 %v995_v50, %v1815_v6  ;;  %v1119_v53 = vmax.f32 %v992_v47, 0.0 }
 0x1f3   : > { %v1120_v52 = vmax.f32 %v994_v49, 0.0 }
 0x1f4   : > { %v1121_v54 = vmax.f32 %v996_v51, 0.0 }
 0x1f5   : > { %v1172_v55 = vpack.c.bf16 %v1120_v52, %v1118_v27 }
 0x1f6   : > { %v1173_v56 = vpack.c.bf16 %v1121_v54, %v1119_v53  ;;  %v999_v57 = vpop.f32.mrb[24].mxu1 }
 0x1f7   : > { %v1000_v58 = vadd.f32 %v999_v57, %v1811_v20  ;;  %v1001_v59 = vpop.f32.mrb[25].mxu1 }
 0x1f8   : > { %v1002_v60 = vadd.f32 %v1001_v59, %v1815_v6  ;;  %v1003_v61 = vpop.f32.mrb[26].mxu1  ;;  %1240 = vmatprep.subr.bf16.mxu0 %v1173_v56 }
 0x1f9   : > { %v1004_v62 = vadd.f32 %v1003_v61, %v1811_v20  ;;  %v1005_v63 = vpop.f32.mrb[27].mxu1  ;;  %1241 = vmatpush1.bf16.xpose.msra.mxu0 %v1172_v55  ;;  %v1122_v1 = vmax.f32 %v1000_v58, 0.0 }
 0x1fa   : > { %v1006_v0 = vadd.f32 %v1005_v63, %v1815_v6  ;;  %v1123_v3 = vmax.f32 %v1002_v60, 0.0 }
 0x1fb   : > { %v1124_v2 = vmax.f32 %v1004_v62, 0.0 }
 0x1fc   : > { %v1125_v4 = vmax.f32 %v1006_v0, 0.0 }
 0x1fd   : > { %v1174_v5 = vpack.c.bf16 %v1124_v2, %v1122_v1 }
 0x1fe   : > { %v1175_v7 = vpack.c.bf16 %v1125_v4, %v1123_v3  ;;  %v1009_v8 = vpop.f32.mrb[28].mxu1 }
 0x1ff   : > { %v1010_v9 = vadd.f32 %v1009_v8, %v1811_v20  ;;  %v1011_v10 = vpop.f32.mrb[29].mxu1 }
 0x200   : > { %v1012_v11 = vadd.f32 %v1011_v10, %v1815_v6  ;;  %v1013_v12 = vpop.f32.mrb[30].mxu1  ;;  %1242 = vmatprep.subr.bf16.mxu0 %v1175_v7 }
 0x201   : > { %v1014_v13 = vadd.f32 %v1013_v12, %v1811_v20  ;;  %v1015_v14 = vpop.f32.mrb[31].mxu1  ;;  %1243 = vmatpush1.bf16.xpose.msra.mxu0 %v1174_v5  ;;  %v1126_v16 = vmax.f32 %v1010_v9, 0.0 }
 0x202   : > { %v1016_v15 = vadd.f32 %v1015_v14, %v1815_v6  ;;  %v1127_v18 = vmax.f32 %v1012_v11, 0.0 }
 0x203   : > { %v1128_v17 = vmax.f32 %v1014_v13, 0.0 }
 0x204   : > { %v1129_v19 = vmax.f32 %v1016_v15, 0.0 }
 0x205   : > { %v1176_v31 = vpack.c.bf16 %v1128_v17, %v1126_v16 }
 0x206   : > { %v1177_v21 = vpack.c.bf16 %v1129_v19, %v1127_v18  ;;  %v1019_v22 = vpop.f32.mrb[32].mxu1 }
 0x207   : > { %v1020_v23 = vadd.f32 %v1019_v22, %v1811_v20  ;;  %v1021_v24 = vpop.f32.mrb[33].mxu1 }
 0x208   : > { %v1022_v25 = vadd.f32 %v1021_v24, %v1815_v6  ;;  %v1023_v29 = vpop.f32.mrb[34].mxu1  ;;  %1244 = vmatprep.subr.bf16.mxu0 %v1177_v21 }
 0x209   : > { %v1024_v32 = vadd.f32 %v1023_v29, %v1811_v20  ;;  %v1025_v33 = vpop.f32.mrb[35].mxu1  ;;  %1245 = vmatpush1.bf16.xpose.msra.mxu0 %v1176_v31  ;;  %v1130_v30 = vmax.f32 %v1020_v23, 0.0 }
 0x20a   : > { %v1026_v35 = vadd.f32 %v1025_v33, %v1815_v6  ;;  %v1131_v37 = vmax.f32 %v1022_v25, 0.0 }
 0x20b   : > { %v1132_v36 = vmax.f32 %v1024_v32, 0.0 }
 0x20c   : > { %v1133_v38 = vmax.f32 %v1026_v35, 0.0 }
 0x20d   : > { %v1178_v40 = vpack.c.bf16 %v1132_v36, %v1130_v30 }
 0x20e   : > { %v1179_v41 = vpack.c.bf16 %v1133_v38, %v1131_v37  ;;  %v1029_v42 = vpop.f32.mrb[36].mxu1 }
 0x20f   : > { %v1030_v43 = vadd.f32 %v1029_v42, %v1811_v20  ;;  %v1031_v44 = vpop.f32.mrb[37].mxu1 }
 0x210   : > { %v1032_v45 = vadd.f32 %v1031_v44, %v1815_v6  ;;  %v1033_v46 = vpop.f32.mrb[38].mxu1  ;;  %1246 = vmatprep.subr.bf16.mxu0 %v1179_v41 }
 0x211   : > { %v1034_v47 = vadd.f32 %v1033_v46, %v1811_v20  ;;  %v1035_v48 = vpop.f32.mrb[39].mxu1  ;;  %1247 = vmatpush1.bf16.xpose.msra.mxu0 %v1178_v40  ;;  %v1134_v50 = vmax.f32 %v1030_v43, 0.0 }
 0x212   : > { %v1036_v49 = vadd.f32 %v1035_v48, %v1815_v6  ;;  %v1135_v27 = vmax.f32 %v1032_v45, 0.0 }
 0x213   : > { %v1136_v51 = vmax.f32 %v1034_v47, 0.0 }
 0x214   : > { %v1137_v52 = vmax.f32 %v1036_v49, 0.0 }
 0x215   : > { %v1180_v53 = vpack.c.bf16 %v1136_v51, %v1134_v50 }
 0x216   : > { %v1181_v54 = vpack.c.bf16 %v1137_v52, %v1135_v27  ;;  %v1039_v55 = vpop.f32.mrb[40].mxu1 }
 0x217   : > { %v1040_v56 = vadd.f32 %v1039_v55, %v1811_v20  ;;  %v1041_v57 = vpop.f32.mrb[41].mxu1 }
 0x218   : > { %v1042_v58 = vadd.f32 %v1041_v57, %v1815_v6  ;;  %v1043_v59 = vpop.f32.mrb[42].mxu1  ;;  %1248 = vmatprep.subr.bf16.mxu0 %v1181_v54 }
 0x219   : > { %v1044_v60 = vadd.f32 %v1043_v59, %v1811_v20  ;;  %v1045_v61 = vpop.f32.mrb[43].mxu1  ;;  %1249 = vmatpush1.bf16.xpose.msra.mxu0 %v1180_v53  ;;  %v1138_v63 = vmax.f32 %v1040_v56, 0.0 }
 0x21a   : > { %v1046_v62 = vadd.f32 %v1045_v61, %v1815_v6  ;;  %v1139_v1 = vmax.f32 %v1042_v58, 0.0 }
 0x21b   : > { %v1140_v0 = vmax.f32 %v1044_v60, 0.0 }
 0x21c   : > { %v1141_v2 = vmax.f32 %v1046_v62, 0.0 }
 0x21d   : > { %v1182_v3 = vpack.c.bf16 %v1140_v0, %v1138_v63 }
 0x21e   : > { %v1183_v4 = vpack.c.bf16 %v1141_v2, %v1139_v1  ;;  %v1049_v5 = vpop.f32.mrb[44].mxu1 }
 0x21f   : > { %v1050_v7 = vadd.f32 %v1049_v5, %v1811_v20  ;;  %v1051_v8 = vpop.f32.mrb[45].mxu1 }
 0x220   : > { %v1052_v9 = vadd.f32 %v1051_v8, %v1815_v6  ;;  %v1053_v10 = vpop.f32.mrb[46].mxu1  ;;  %1250 = vmatprep.subr.bf16.mxu0 %v1183_v4 }
 0x221   : > { %v1054_v11 = vadd.f32 %v1053_v10, %v1811_v20  ;;  %v1055_v12 = vpop.f32.mrb[47].mxu1  ;;  %1251 = vmatpush1.bf16.xpose.msra.mxu0 %v1182_v3  ;;  %v1142_v14 = vmax.f32 %v1050_v7, 0.0 }
 0x222   : > { %v1056_v13 = vadd.f32 %v1055_v12, %v1815_v6  ;;  %v1143_v16 = vmax.f32 %v1052_v9, 0.0 }
 0x223   : > { %v1144_v15 = vmax.f32 %v1054_v11, 0.0 }
 0x224   : > { %v1145_v17 = vmax.f32 %v1056_v13, 0.0 }
 0x225   : > { %v1184_v18 = vpack.c.bf16 %v1144_v15, %v1142_v14 }
 0x226   : > { %v1185_v19 = vpack.c.bf16 %v1145_v17, %v1143_v16  ;;  %v1059_v31 = vpop.f32.mrb[48].mxu1 }
 0x227   : > { %v1060_v21 = vadd.f32 %v1059_v31, %v1811_v20  ;;  %v1061_v22 = vpop.f32.mrb[49].mxu1 }
 0x228   : > { %v1062_v23 = vadd.f32 %v1061_v22, %v1815_v6  ;;  %v1063_v24 = vpop.f32.mrb[50].mxu1  ;;  %1252 = vmatprep.subr.bf16.mxu0 %v1185_v19  ;;  %v1199_v19 = vpop.permute.xlu0 %1198 }
 0x229   : > { %v1064_v25 = vadd.f32 %v1063_v24, %v1811_v20  ;;  %v1065_v29 = vpop.f32.mrb[51].mxu1  ;;  %1253 = vmatpush1.bf16.xpose.msra.mxu0 %v1184_v18  ;;  %v1146_v33 = vmax.f32 %v1060_v21, 0.0  ;;  %v1220_v18 = vrot.slane %v1823_v34, %v1829_v39  ;;  %v1204_v31 = vrot.slane %v1199_v19, %v1730_v28 }
 0x22a   : > { %v1066_v32 = vadd.f32 %v1065_v29, %v1815_v6  ;;  %v1147_v30 = vmax.f32 %v1062_v23, 0.0 }
 0x22b   : > { %v1148_v35 = vmax.f32 %v1064_v25, 0.0 }
 0x22c   : > { %v1149_v36 = vmax.f32 %v1066_v32, 0.0 }
 0x22d   : > { %v1186_v37 = vpack.c.bf16 %v1148_v35, %v1146_v33 }
 0x22e   : > { %v1187_v38 = vpack.c.bf16 %v1149_v36, %v1147_v30  ;;  %v1069_v40 = vpop.f32.mrb[52].mxu1 }
 0x22f   : > { %v1070_v41 = vadd.f32 %v1069_v40, %v1811_v20  ;;  %v1071_v42 = vpop.f32.mrb[53].mxu1 }
 0x230   : > { %v1072_v43 = vadd.f32 %v1071_v42, %v1815_v6  ;;  %v1073_v44 = vpop.f32.mrb[54].mxu1  ;;  %1254 = vmatprep.subr.bf16.mxu0 %v1187_v38 }
 0x231   : > { %v1074_v45 = vadd.f32 %v1073_v44, %v1811_v20  ;;  %v1075_v46 = vpop.f32.mrb[55].mxu1  ;;  %1255 = vmatpush1.bf16.xpose.msra.mxu0 %v1186_v37  ;;  %v1150_v48 = vmax.f32 %v1070_v41, 0.0 }
 0x232   : > { %v1076_v47 = vadd.f32 %v1075_v46, %v1815_v6  ;;  %v1151_v50 = vmax.f32 %v1072_v43, 0.0 }
 0x233   : > { %v1152_v49 = vmax.f32 %v1074_v45, 0.0 }
 0x234   : > { %v1153_v51 = vmax.f32 %v1076_v47, 0.0 }
 0x235   : > { %v1188_v27 = vpack.c.bf16 %v1152_v49, %v1150_v48 }
 0x236   : > { %v1189_v52 = vpack.c.bf16 %v1153_v51, %v1151_v50  ;;  %v1079_v53 = vpop.f32.mrb[56].mxu1 }
 0x237   : > { %v1080_v54 = vadd.f32 %v1079_v53, %v1811_v20  ;;  %v1081_v55 = vpop.f32.mrb[57].mxu1 }
 0x238   : > { %v1082_v56 = vadd.f32 %v1081_v55, %v1815_v6  ;;  %v1083_v57 = vpop.f32.mrb[58].mxu1  ;;  %1256 = vmatprep.subr.bf16.mxu0 %v1189_v52 }
 0x239   : > { %v1084_v58 = vadd.f32 %v1083_v57, %v1811_v20  ;;  %v1085_v59 = vpop.f32.mrb[59].mxu1  ;;  %1257 = vmatpush1.bf16.xpose.msra.mxu0 %v1188_v27  ;;  %v1154_v61 = vmax.f32 %v1080_v54, 0.0 }
 0x23a   : > { %v1086_v60 = vadd.f32 %v1085_v59, %v1815_v6  ;;  %v1155_v63 = vmax.f32 %v1082_v56, 0.0 }
 0x23b   : > { %v1156_v62 = vmax.f32 %v1084_v58, 0.0 }
 0x23c   : > { %v1157_v0 = vmax.f32 %v1086_v60, 0.0 }
 0x23d   : > { %v1190_v1 = vpack.c.bf16 %v1156_v62, %v1154_v61 }
 0x23e   : > { %v1191_v2 = vpack.c.bf16 %v1157_v0, %v1155_v63  ;;  %v1089_v3 = vpop.f32.mrb[60].mxu1 }
 0x23f   : > { %v1090_v4 = vadd.f32 %v1089_v3, %v1811_v20  ;;  %v1091_v5 = vpop.f32.mrb[61].mxu1 }
 0x240   : > { %v1092_v7 = vadd.f32 %v1091_v5, %v1815_v6  ;;  %v1093_v8 = vpop.f32.mrb[62].mxu1  ;;  %1258 = vmatprep.subr.bf16.mxu0 %v1191_v2 }
 0x241   : > { %v1094_v9 = vadd.f32 %v1093_v8, %v1811_v20  ;;  %v1095_v10 = vpop.f32.mrb[63].mxu1  ;;  %1259 = vmatpush1.bf16.xpose.msra.mxu0 %v1190_v1  ;;  %v1158_v12 = vmax.f32 %v1090_v4, 0.0 }
 0x242   : > { %v1096_v11 = vadd.f32 %v1095_v10, %v1815_v6  ;;  %v1159_v14 = vmax.f32 %v1092_v7, 0.0 }
 0x243   : > { %v1160_v13 = vmax.f32 %v1094_v9, 0.0 }
 0x244   : > { %v1161_v15 = vmax.f32 %v1096_v11, 0.0 }
 0x245   : > { %v1192_v16 = vpack.c.bf16 %v1160_v13, %v1158_v12 }
 0x246   : > { %v1193_v17 = vpack.c.bf16 %v1161_v15, %v1159_v14 }
 0x248   : > { %1260 = vmatprep.subr.bf16.mxu0 %v1193_v17 }
 0x249   : > { %1261 = vmatpush1.bf16.xpose.msra.mxu0 %v1192_v16 }
 0x250   : > { %1263 = vmatmul.mubr.bf16.vlgmr.msra.gmra.mrb[64].mxu0 %v1220_v18 }
 0x323   : > { %v1264_v20 = vpop.f32.mrb[64].mxu0 }
 0x324   : > { %v1265_v21 = vadd.f32 %v1264_v20, %v1204_v31  ;;  %v1266_v22 = vpop.f32.mrb[65].mxu0 }
 0x325   : > { %v1267_v6 = vadd.f32 %v1266_v22, %v1204_v31  ;;  %v1268_v23 = vpop.f32.mrb[66].mxu0 }
 0x326   : > { %v1415_v24 = vmul.f32 -1.442695, %v1265_v21  ;;  %v1269_v25 = vpop.f32.mrb[67].mxu0 }
 0x327   : > { %v1416_v29 = vmul.f32 -1.442695, %v1267_v6 }
 0x328   : > { %1482 = vpow2.f32 %v1415_v24 }
 0x329   : > { %1484 = vpow2.f32 %v1416_v29 }
 0x332   : > { %v1483_v32 = vpop.eup %1482 }
 0x333   : > { %v1485_v33 = vpop.eup %1484  ;;  %v1277_v35 = vadd.f32 1.0, %v1483_v32 }
 0x334   : > { %v1278_v30 = vadd.f32 1.0, %v1485_v33 }
 0x335   : > { %1486 = vrcp.f32 %v1277_v35 }
 0x336   : > { %1488 = vrcp.f32 %v1278_v30 }
 0x33f   : > { %v1487_v28 = vpop.eup %1486 }
 0x340   : > { %v1489_v34 = vpop.eup %1488 }
 0x341   : > { %v1285_v36 = vcombine.low %v1487_v28, %v1489_v34 }
 0x343   : > { %v1292_v37 = vrot.slane %v1285_v36, %v1829_v39 }
 0x345   : > { %v1299_v38 = vrot.slane %v1292_v37, %v1829_v39 }
 0x347   : > { %1305 = vst.msk [vmem:[%s280_s22] sm:$0x3] %vm1303_vm3, %v1299_v38 }
 0x348 PF: > { %s19_s26 = sadd.s32 1, %s1496_s26  }
 0x349   : > { %p16_p5 = scmp.ge.s32.totalorder %s19_s26, 4  }
 0x34b   :  { %18 = sbr.rel (!%p16_p5) target bundleno = 3 (0x3), region = 78 }

</bundles_post_ra>
